<compile_context>
chip_gen: v7x
topology: tpu7x:2x2x1
jax: 0.10.0
libtpu: 0.0.40
codegen_flags: <defaults>
</compile_context>

<pallas_src>
import functools
import numpy as np
import jax
import jax.numpy as jnp
from jax.experimental import pallas as pl
from jax.experimental.pallas import tpu as pltpu

EPS_BN = 1e-3            # norm_fn = partial(BatchNorm1d, eps=0.001, momentum=0.01)
ROW_PAD = 512            # all per-voxel arrays are row-padded to a multiple of this
TM = 512                 # conv / segment-sum row tile
BN_TN = 512              # BN-apply row tile

SUBM_OFFSETS = [(dx, dy, dz) for dx in (-1, 0, 1) for dy in (-1, 0, 1) for dz in (-1, 0, 1)]
DOWN_OFFSETS = [(dx, dy, dz) for dx in (0, 1) for dy in (0, 1) for dz in (0, 1)]


def _vmem_budget():
    """Per-generation VMEM budget: ~96 MiB conv limit on v5e/v6e (128 MiB phys),
    ~48 MiB on v7x (64 MiB phys); feature-table residency gate ~20% of physical."""
    try:
        cap = int(pltpu.get_tpu_info().vmem_capacity_bytes)
    except Exception:
        cap = 64 * 1024 * 1024              # conservative (v7x-sized) default
    limit = min(cap * 3 // 4, 112 * 1024 * 1024)
    resident = min(cap // 5, 24 * 1024 * 1024)
    return limit, resident


VMEM_LIMIT, FEAT_RESIDENT_BYTES = _vmem_budget()


def _pad_rows(n):
    # always leave at least one zero row (row index n) as the gather sentinel row
    return (n // ROW_PAD + 1) * ROW_PAD


def _spike(x):
    # Multispike.forward: torch.floor(clamp(x, 0, 4) + 0.5)
    return jnp.floor(jnp.clip(x, 0.0, 4.0) + 0.5)


# ----------------------------- Pallas conv kernels -----------------------------
# Both conv paths emit (out, per-tile partial sum, per-tile partial sumsq) so the BN stats
# reduction never re-reads the (Mp, C) conv output from HBM.

def _fused_conv_kernel(tbl_ref, feat_ref, w_ref, o_ref, s_ref, ss_ref):
    feat = feat_ref[...]                                  # (Np, Cin) VMEM-resident table
    tbl = tbl_ref[...]                                    # (K, TM) int32 rulebook tile
    acc = jnp.zeros(o_ref.shape, jnp.float32)
    for k in range(tbl_ref.shape[0]):                     # static unroll over kernel offsets
        g = jnp.take(feat, tbl[k, :], axis=0)             # in-VMEM row gather, (TM, Cin)
        acc = acc + jnp.dot(g, w_ref[k], preferred_element_type=jnp.float32)
    o_ref[...] = acc
    s_ref[...] = jnp.broadcast_to(jnp.sum(acc, axis=0, keepdims=True), s_ref.shape)
    ss_ref[...] = jnp.broadcast_to(jnp.sum(acc * acc, axis=0, keepdims=True), ss_ref.shape)


@jax.jit
def conv_fused(tbl_T, feats, w_kco):
    """Fused gather + matmul.  tbl_T: (K, Mp) int32, feats: (Np, Cin), w_kco: (K, Cin, Cout)."""
    K, Mp = tbl_T.shape
    Np, Cin = feats.shape
    Cout = w_kco.shape[2]
    nt = Mp // TM
    # TODO(synk): pipeline_mode=pl.Buffered(1) on the constant-index feature/weight specs would
    # reclaim their duplicate buffers on v7x's 64 MiB VMEM.
    out, s_p, ss_p = pl.pallas_call(
        _fused_conv_kernel,
        out_shape=(jax.ShapeDtypeStruct((Mp, Cout), jnp.float32),
                   jax.ShapeDtypeStruct((8 * nt, Cout), jnp.float32),
                   jax.ShapeDtypeStruct((8 * nt, Cout), jnp.float32)),
        grid=(nt,),
        in_specs=[pl.BlockSpec((K, TM), lambda i: (0, i)),
                  pl.BlockSpec((Np, Cin), lambda i: (0, 0)),
                  pl.BlockSpec((K, Cin, Cout), lambda i: (0, 0, 0))],
        out_specs=(pl.BlockSpec((TM, Cout), lambda i: (i, 0)),
                   pl.BlockSpec((8, Cout), lambda i: (i, 0)),
                   pl.BlockSpec((8, Cout), lambda i: (i, 0))),
        compiler_params=pltpu.CompilerParams(
            dimension_semantics=("parallel",), vmem_limit_bytes=VMEM_LIMIT),
    )(tbl_T, feats, w_kco)
    s = s_p.reshape(nt, 8, Cout)[:, 0].sum(axis=0, keepdims=True)
    ss = ss_p.reshape(nt, 8, Cout)[:, 0].sum(axis=0, keepdims=True)
    return out, s, ss


def _matmul_conv_kernel(g_ref, w_ref, o_ref, s_ref, ss_ref):
    acc = jnp.dot(g_ref[...], w_ref[...], preferred_element_type=jnp.float32)
    o_ref[...] = acc
    s_ref[...] = jnp.broadcast_to(jnp.sum(acc, axis=0, keepdims=True), s_ref.shape)
    ss_ref[...] = jnp.broadcast_to(jnp.sum(acc * acc, axis=0, keepdims=True), ss_ref.shape)


@jax.jit
def conv_matmul(g, w_flat):
    """Fallback path: pre-gathered (Mp, K*Cin) matrix @ (K*Cin, Cout)."""
    Mp, Kc = g.shape
    Cout = w_flat.shape[1]
    nt = Mp // TM
    out, s_p, ss_p = pl.pallas_call(
        _matmul_conv_kernel,
        out_shape=(jax.ShapeDtypeStruct((Mp, Cout), jnp.float32),
                   jax.ShapeDtypeStruct((8 * nt, Cout), jnp.float32),
                   jax.ShapeDtypeStruct((8 * nt, Cout), jnp.float32)),
        grid=(nt,),
        in_specs=[pl.BlockSpec((TM, Kc), lambda i: (i, 0)),
                  pl.BlockSpec((Kc, Cout), lambda i: (0, 0))],
        out_specs=(pl.BlockSpec((TM, Cout), lambda i: (i, 0)),
                   pl.BlockSpec((8, Cout), lambda i: (i, 0)),
                   pl.BlockSpec((8, Cout), lambda i: (i, 0))),
        compiler_params=pltpu.CompilerParams(
            dimension_semantics=("parallel",), vmem_limit_bytes=VMEM_LIMIT),
    )(g, w_flat)
    s = s_p.reshape(nt, 8, Cout)[:, 0].sum(axis=0, keepdims=True)
    ss = ss_p.reshape(nt, 8, Cout)[:, 0].sum(axis=0, keepdims=True)
    return out, s, ss


_FUSED_STATE = {"ok": None}


def _fused_gather_supported():
    """One-shot smoke + accuracy test of the in-kernel gather path against a jnp reference."""
    if _FUSED_STATE["ok"] is None:
        try:
            k1, k2, k3 = jax.random.split(jax.random.PRNGKey(123), 3)
            np_rows, c, cout, kk = ROW_PAD, 64, 64, 27
            feats = _spike(jax.random.normal(k1, (np_rows, c), jnp.float32)).astype(jnp.bfloat16)
            tbl_T = jax.random.randint(k2, (kk, ROW_PAD), 0, np_rows, dtype=jnp.int32)
            w = (0.02 * jax.random.normal(k3, (kk, c, cout), jnp.float32)).astype(jnp.bfloat16)
            out, _, _ = conv_fused(tbl_T, feats, w)
            g = jnp.take(feats, jnp.transpose(tbl_T), axis=0).reshape(ROW_PAD, kk * c)
            ref = jnp.dot(g.astype(jnp.float32), w.reshape(kk * c, cout).astype(jnp.float32))
            _FUSED_STATE["ok"] = bool(jnp.allclose(out, ref, rtol=2e-2, atol=2e-2))
        except Exception:
            _FUSED_STATE["ok"] = False
    return _FUSED_STATE["ok"]


def sparse_conv(feats, tbl_T, conv):
    """Sparse conv: gather K neighbors per output voxel, matmul with (K*Cin, Cout) weights.

    feats: (Np, Cin) row-padded (row Np-? .. includes the zero sentinel row).
    tbl_T: (K, Mp) int32 rulebook (sentinel entries point at the zero row).
    Returns (out (Mp, Cout) f32, sum (1, Cout), sumsq (1, Cout))."""
    feat_bytes = feats.size * feats.dtype.itemsize
    if (feats.dtype == jnp.bfloat16 and feat_bytes <= FEAT_RESIDENT_BYTES
            and _fused_gather_supported()):
        try:
            return conv_fused(tbl_T, feats, conv["kco"])
        except Exception:
            _FUSED_STATE["ok"] = False
    K, Mp = tbl_T.shape
    Cin = feats.shape[1]
    g = jnp.take(feats, jnp.transpose(tbl_T), axis=0).reshape(Mp, K * Cin)
    return conv_matmul(g, conv["flat"])


# ----------------------------- BatchNorm + Multispike -----------------------------

def _make_bn_kernel(has_res, need_y, n_valid):
    inv_n = 1.0 / float(n_valid)

    def kernel(*refs):
        if has_res:
            x_ref, res_ref, s_ref, ss_ref, g_ref, b_ref = refs[:6]
            outs = refs[6:]
        else:
            x_ref, s_ref, ss_ref, g_ref, b_ref = refs[:5]
            res_ref = None
            outs = refs[5:]
        mean = s_ref[...] * inv_n
        var = ss_ref[...] * inv_n - mean * mean          # biased var (training-mode BN)
        scale = g_ref[...] * jax.lax.rsqrt(var + EPS_BN)
        shift = b_ref[...] - mean * scale
        y = x_ref[...] * scale + shift
        if has_res:
            y = y + res_ref[...]
        # keep padded rows exactly zero so they stay valid gather-sentinel / stats rows
        row = (jax.lax.broadcasted_iota(jnp.int32, y.shape, 0)
               + pl.program_id(0) * y.shape[0])
        y = jnp.where(row < n_valid, y, 0.0)
        if need_y:
            y_ref, sp_ref = outs
            y_ref[...] = y
        else:
            (sp_ref,) = outs
        sp_ref[...] = _spike(y).astype(sp_ref.dtype)     # Multispike fused; exact in bf16
    return kernel


@functools.partial(jax.jit, static_argnames=("n_valid", "need_y"))
def _bn_apply_nores(x, s, ss, gamma, beta, *, n_valid, need_y):
    Mp, C = x.shape
    row = lambda: pl.BlockSpec((BN_TN, C), lambda i: (i, 0))
    vec = lambda: pl.BlockSpec((1, C), lambda i: (0, 0))
    if need_y:
        out_shape = (jax.ShapeDtypeStruct((Mp, C), jnp.float32),
                     jax.ShapeDtypeStruct((Mp, C), jnp.bfloat16))
        out_specs = (row(), row())
    else:
        out_shape = jax.ShapeDtypeStruct((Mp, C), jnp.bfloat16)
        out_specs = row()
    return pl.pallas_call(
        _make_bn_kernel(False, need_y, n_valid),
        out_shape=out_shape,
        grid=(Mp // BN_TN,),
        in_specs=[row(), vec(), vec(), vec(), vec()],
        out_specs=out_specs,
        compiler_params=pltpu.CompilerParams(dimension_semantics=("parallel",)),
    )(x, s, ss, gamma.reshape(1, C), beta.reshape(1, C))


@functools.partial(jax.jit, static_argnames=("n_valid",))
def _bn_apply_res(x, res, s, ss, gamma, beta, *, n_valid):
    Mp, C = x.shape
    row = lambda: pl.BlockSpec((BN_TN, C), lambda i: (i, 0))
    vec = lambda: pl.BlockSpec((1, C), lambda i: (0, 0))
    return pl.pallas_call(
        _make_bn_kernel(True, True, n_valid),
        out_shape=(jax.ShapeDtypeStruct((Mp, C), jnp.float32),
                   jax.ShapeDtypeStruct((Mp, C), jnp.bfloat16)),
        grid=(Mp // BN_TN,),
        in_specs=[row(), row(), vec(), vec(), vec(), vec()],
        out_specs=(row(), row()),
        compiler_params=pltpu.CompilerParams(dimension_semantics=("parallel",)),
    )(x, res, s, ss, gamma.reshape(1, C), beta.reshape(1, C))


def batchnorm(x, s, ss, gamma, beta, n_valid, res=None, need_y=True):
    """BN1d (training stats from the fused conv epilogue) + optional residual + Multispike.
    Returns (y_f32 or None, spike_bf16); rows beyond n_valid are exactly zero."""
    if res is not None:
        return _bn_apply_res(x, res, s, ss, gamma, beta, n_valid=n_valid)
    if need_y:
        return _bn_apply_nores(x, s, ss, gamma, beta, n_valid=n_valid, need_y=True)
    sp = _bn_apply_nores(x, s, ss, gamma, beta, n_valid=n_valid, need_y=False)
    return None, sp


# ----------------------------- segment-sum head -----------------------------

def _segsum_kernel(ids_ref, x_ref, o_ref):
    @pl.when(pl.program_id(0) == 0)
    def _():
        o_ref[...] = jnp.zeros_like(o_ref)
    ids = ids_ref[...]                                          # (1, TM), -1 for padded rows
    bidx = jax.lax.broadcasted_iota(jnp.int32, (o_ref.shape[0], ids.shape[1]), 0)
    onehot = (bidx == ids).astype(jnp.float32)                  # (BP, TM), one MXU op per tile
    o_ref[...] += jnp.dot(onehot, x_ref[...], preferred_element_type=jnp.float32)


@functools.partial(jax.jit, static_argnames=("num_batches",))
def segment_sum(ids_row, x, num_batches):
    Mp, C = x.shape
    BP = ((num_batches + 7) // 8) * 8
    return pl.pallas_call(
        _segsum_kernel,
        out_shape=jax.ShapeDtypeStruct((BP, C), jnp.float32),
        grid=(Mp // TM,),
        in_specs=[pl.BlockSpec((1, TM), lambda i: (0, i)),
                  pl.BlockSpec((TM, C), lambda i: (i, 0))],
        out_specs=pl.BlockSpec((BP, C), lambda i: (0, 0)),
        compiler_params=pltpu.CompilerParams(dimension_semantics=("arbitrary",)),
    )(ids_row, x)


# ----------------------------- host-side sparse glue (vectorized numpy) -----------------------------
# spconv's hash-table indice generation has no Pallas equivalent; the rulebooks are built with
# packed-coordinate sort + searchsorted on the host and cached per coordinate set.

def subm_table(coords):
    """SubMConv3d(k=3,s=1,p=1) neighbor table: (N, 27) voxel ids, sentinel = N."""
    coords = np.asarray(coords, np.int64)
    N = coords.shape[0]
    dims = coords[:, 1:].max(axis=0) + 3

    def key(c):
        return ((c[..., 0] * dims[0] + c[..., 1]) * dims[1] + c[..., 2]) * dims[2] + c[..., 3]

    base = coords.copy()
    base[:, 1:] += 1
    keys = key(base)
    order = np.argsort(keys, kind="stable")
    skeys = keys[order]

    offs = np.asarray(SUBM_OFFSETS, np.int64)
    q = np.repeat(base[:, None, :], 27, axis=1)
    q[:, :, 1:] += offs[None, :, :]
    qk = key(q).reshape(-1)

    pos = np.searchsorted(skeys, qk)
    pos_c = np.minimum(pos, N - 1)
    found = skeys[pos_c] == qk
    return np.where(found, order[pos_c], N).astype(np.int32).reshape(N, 27)


def down_table(coords):
    """SparseConv3d(k=2,s=2): output voxel per occupied coarse cell, (M, 8) table, sentinel = N."""
    coords = np.asarray(coords, np.int64)
    N = coords.shape[0]
    dims = coords[:, 1:].max(axis=0) + 2

    def key(c):
        return ((c[..., 0] * dims[0] + c[..., 1]) * dims[1] + c[..., 2]) * dims[2] + c[..., 3]

    keys = key(coords)
    order = np.argsort(keys, kind="stable")
    skeys = keys[order]

    oc = coords.copy()
    oc[:, 1:] //= 2
    out_coords = np.unique(oc, axis=0)          # ordering detail differs from spconv's hash;
    M = out_coords.shape[0]                     # the final per-batch mean is invariant to it

    offs = np.asarray(DOWN_OFFSETS, np.int64)
    q = np.repeat(out_coords[:, None, :], 8, axis=1)
    q[:, :, 1:] = q[:, :, 1:] * 2 + offs[None, :, :]
    qk = key(q).reshape(-1)

    pos = np.searchsorted(skeys, qk)
    pos_c = np.minimum(pos, N - 1)
    found = skeys[pos_c] == qk
    tbl = np.where(found, order[pos_c], N).astype(np.int32).reshape(M, 8)
    return out_coords.astype(np.int32), tbl


# ----------------------------- model -----------------------------

def trunc_normal(key, shape, std=0.02):
    return std * jax.random.truncated_normal(key, -2.0, 2.0, shape, jnp.float32)


class SNN3dvPallas:
    def __init__(self, in_channels, num_classes, key,
                 embed_channels=64,
                 enc_channels=(64, 64, 128, 256),
                 groups=(2, 4, 8, 16),
                 enc_depth=(2, 3, 6, 4)):
        keys = iter(jax.random.split(key, 256))

        def subm(cin, cout, dtype):           # SubMConv3d: trunc_normal_(std=0.02), bias=False
            w = trunc_normal(next(keys), (27, cin, cout)).astype(dtype)
            return dict(kco=w, flat=w.reshape(27 * cin, cout))

        def down(cin, cout):                  # SparseConv3d default (kaiming-ish) init
            w = (jax.random.normal(next(keys), (8, cin, cout), jnp.float32)
                 / np.sqrt(8 * cin)).astype(jnp.bfloat16)
            return dict(kco=w, flat=w.reshape(8 * cin, cout))

        def bn(c):                            # BatchNorm1d: weight=1, bias=0
            return (jnp.ones((c,), jnp.float32), jnp.zeros((c,), jnp.float32))

        self.in_channels = in_channels
        self.num_classes = num_classes
        self.num_stages = len(enc_channels)
        self._cache = {}                      # rulebook cache keyed by coordinate bytes

        # first stem conv sees raw f32 features -> stays f32; everything after sees bf16 spikes
        self.stem = dict(
            w=[subm(in_channels, embed_channels, jnp.float32),
               subm(embed_channels, embed_channels, jnp.bfloat16),
               subm(embed_channels, embed_channels, jnp.bfloat16)],
            bn=[bn(embed_channels) for _ in range(3)])

        self.enc = []
        prev = embed_channels
        for i in range(self.num_stages):
            c = enc_channels[i]
            assert c % groups[i] == 0
            stage = dict(down=down(prev, c), down_bn=bn(c), blocks=[])
            for _ in range(enc_depth[i]):
                stage["blocks"].append(dict(
                    conv_b=subm(c, c, jnp.bfloat16), bn_b=bn(c),
                    conv_v1=subm(c, c, jnp.bfloat16), bn_v1=bn(c),
                    conv_v2=subm(c, c, jnp.bfloat16), bn_v2=bn(c)))
            self.enc.append(stage)
            prev = c

        # final 1x1 SubMConv3d(bias=True); mean-over-batch commutes with it, so it is applied
        # after the per-batch feature mean as a tiny dense matmul.
        self.final_w = trunc_normal(next(keys), (prev, num_classes))
        self.final_b = jnp.zeros((num_classes,), jnp.float32)

    # ---- cached rulebooks (padded, transposed, uploaded once per coordinate set) ----
    def _subm_table_dev(self, coords):
        ckey = ("subm", coords.tobytes())
        if ckey not in self._cache:
            n = coords.shape[0]
            tbl = subm_table(coords)
            mp = _pad_rows(n)
            t = np.full((mp, 27), n, np.int32)
            t[:n] = tbl
            self._cache[ckey] = jnp.asarray(t.T)          # (27, mp)
        return self._cache[ckey]

    def _down_table_dev(self, coords):
        ckey = ("down", coords.tobytes())
        if ckey not in self._cache:
            n = coords.shape[0]
            out_coords, tbl = down_table(coords)
            m = out_coords.shape[0]
            mp = _pad_rows(m)
            t = np.full((mp, 8), n, np.int32)
            t[:m] = tbl
            self._cache[ckey] = (out_coords, jnp.asarray(t.T))   # (8, mp)
        return self._cache[ckey]

    def __call__(self, grid_coord, feat, offset):
        # offset2batch
        offset = np.asarray(offset, np.int64)
        counts = np.diff(np.concatenate([np.zeros(1, np.int64), offset]))
        batch = np.repeat(np.arange(len(offset), dtype=np.int64), counts)
        coords = np.concatenate(
            [batch[:, None].astype(np.int32), np.asarray(grid_coord, np.int32)], axis=1)
        # spatial_shape = max(grid_coord) + 96 only bounds spconv's hash grid; not needed here.
        n = coords.shape[0]
        num_batches = int(len(offset))

        f = jnp.asarray(feat, jnp.float32)
        f = jnp.pad(f, ((0, _pad_rows(n) - n), (0, 0)))        # zero rows incl. sentinel row

        # ---- stem: (conv, BN, spike) x2, conv, BN ----
        tbl_T = self._subm_table_dev(coords)
        x, s, ss = sparse_conv(f, tbl_T, self.stem["w"][0])
        _, ys = batchnorm(x, s, ss, *self.stem["bn"][0], n, need_y=False)
        x, s, ss = sparse_conv(ys, tbl_T, self.stem["w"][1])
        _, ys = batchnorm(x, s, ss, *self.stem["bn"][1], n, need_y=False)
        x, s, ss = sparse_conv(ys, tbl_T, self.stem["w"][2])
        _, ys = batchnorm(x, s, ss, *self.stem["bn"][2], n, need_y=False)

        # ---- encoder stages ----
        y = None
        for stage in self.enc:
            out_coords, dtbl_T = self._down_table_dev(coords)
            m = out_coords.shape[0]
            x, s, ss = sparse_conv(ys, dtbl_T, stage["down"])          # Multispike -> SparseConv3d
            y, ys = batchnorm(x, s, ss, *stage["down_bn"], m)
            coords, n = out_coords, m
            tbl_T = self._subm_table_dev(coords)
            for blk in stage["blocks"]:
                h, s, ss = sparse_conv(ys, tbl_T, blk["conv_b"])
                feat1, feat1_s = batchnorm(h, s, ss, *blk["bn_b"], n, res=y)   # block(x)+x.features
                h, s, ss = sparse_conv(feat1_s, tbl_T, blk["conv_v1"])
                _, y2_s = batchnorm(h, s, ss, *blk["bn_v1"], n, need_y=False)
                h, s, ss = sparse_conv(y2_s, tbl_T, blk["conv_v2"])
                y, ys = batchnorm(h, s, ss, *blk["bn_v2"], n, res=feat1)       # voxel_block(x)+res

        # ---- head: scatter-mean over batch, then 1x1 conv (order commutes exactly) ----
        mp = y.shape[0]
        ids_row = np.full((1, mp), -1, np.int32)
        ids_row[0, :n] = coords[:, 0]
        sums = segment_sum(jnp.asarray(ids_row), y, num_batches=num_batches)
        cnt = np.maximum(np.bincount(coords[:, 0], minlength=num_batches), 1)
        mean = sums[:num_batches] / jnp.asarray(cnt, jnp.float32)[:, None]
        return mean @ self.final_w + self.final_b


# ----------------------------- demo -----------------------------

if __name__ == "__main__":
    key = jax.random.PRNGKey(0)
    k_coord, k_feat, k_param = jax.random.split(key, 3)

    B = 2
    pts_per_batch = 64
    GRID = 32
    in_channels = 4
    num_classes = 5

    # unique voxel coordinates per batch (spconv assumes voxelized, unique indices)
    coord_list = []
    for b in range(B):
        kb = jax.random.fold_in(k_coord, b)
        cells = jax.random.permutation(kb, GRID ** 3)[:pts_per_batch]
        x = cells // (GRID * GRID)
        y = (cells // GRID) % GRID
        z = cells % GRID
        coord_list.append(jnp.stack([x, y, z], axis=1))
    grid_coord = jnp.concatenate(coord_list, axis=0).astype(jnp.int32)   # (128, 3)
    feat = jax.random.normal(k_feat, (B * pts_per_batch, in_channels), jnp.float32)
    offset = jnp.array([pts_per_batch, 2 * pts_per_batch], jnp.int32)

    model = SNN3dvPallas(in_channels, num_classes, k_param)
    out = model(np.asarray(grid_coord), feat, np.asarray(offset))
    out = jax.block_until_ready(out)
    assert out.shape == (B, num_classes), out.shape
    assert bool(jnp.all(jnp.isfinite(out)))
    print("KERNEL_OK")
</pallas_src>

<mosaic_0001>
module attributes {stable_mosaic.version = 11 : i64} {
  func.func @_matmul_conv_kernel(%arg0: i32, %arg1: memref<512x108xf32, #tpu.memory_space<vmem>>, %arg2: memref<108x64xf32, #tpu.memory_space<vmem>>, %arg3: memref<512x64xf32, #tpu.memory_space<vmem>>, %arg4: memref<8x64xf32, #tpu.memory_space<vmem>>, %arg5: memref<8x64xf32, #tpu.memory_space<vmem>>) attributes {dimension_semantics = [#tpu.dimension_semantics<parallel>], iteration_bounds = array<i64: 1>, scalar_prefetch = 0 : i64, scratch_operands = 0 : i64, tpu.core_type = #tpu.core_type<tc>, window_params = [{transform_indices = @transform_0, window_bounds = array<i64: 512, 108>}, {pipeline_mode = #tpu.pipeline_mode<synchronous>, transform_indices = @transform_1, window_bounds = array<i64: 108, 64>}, {transform_indices = @transform_2, window_bounds = array<i64: 512, 64>}, {transform_indices = @transform_3, window_bounds = array<i64: 8, 64>}, {transform_indices = @transform_4, window_bounds = array<i64: 8, 64>}]} {
    %c0 = arith.constant 0 : index
    %c0_0 = arith.constant 0 : index
    %0 = vector.load %arg1[%c0, %c0_0] : memref<512x108xf32, #tpu.memory_space<vmem>>, vector<512x108xf32>
    %c0_1 = arith.constant 0 : index
    %c0_2 = arith.constant 0 : index
    %1 = vector.load %arg2[%c0_1, %c0_2] : memref<108x64xf32, #tpu.memory_space<vmem>>, vector<108x64xf32>
    %cst = arith.constant dense<0.000000e+00> : vector<512x64xf32>
    %2 = tpu.matmul %0, %1, %cst {dimension_numbers = #tpu.dot_dimension_numbers<[1], [0], [0], [1], [0, 0, 1, 1], [], []>} : vector<512x108xf32>, vector<108x64xf32>, vector<512x64xf32> -> vector<512x64xf32>
    %c0_3 = arith.constant 0 : index
    %c0_4 = arith.constant 0 : index
    %3 = vector.load %arg3[%c0_3, %c0_4] : memref<512x64xf32, #tpu.memory_space<vmem>>, vector<512x64xf32>
    tpu.vector_store %arg3[%c0_3, %c0_4], %2 {strides = array<i32>} : memref<512x64xf32, #tpu.memory_space<vmem>>, vector<512x64xf32>,
    %cst_5 = arith.constant dense<0.000000e+00> : vector<64xf32>
    %4 = vector.multi_reduction <add>, %2, %cst_5 [0] : vector<512x64xf32> to vector<64xf32>
    %5 = vector.shape_cast %4 : vector<64xf32> to vector<1x64xf32>
    %6 = vector.shape_cast %5 : vector<1x64xf32> to vector<1x64xf32>
    %7 = vector.broadcast %6 : vector<1x64xf32> to vector<8x64xf32>
    %c0_6 = arith.constant 0 : index
    %c0_7 = arith.constant 0 : index
    %8 = vector.load %arg4[%c0_6, %c0_7] : memref<8x64xf32, #tpu.memory_space<vmem>>, vector<8x64xf32>
    tpu.vector_store %arg4[%c0_6, %c0_7], %7 {strides = array<i32>} : memref<8x64xf32, #tpu.memory_space<vmem>>, vector<8x64xf32>,
    %9 = arith.mulf %2, %2 : vector<512x64xf32>
    %cst_8 = arith.constant dense<0.000000e+00> : vector<64xf32>
    %10 = vector.multi_reduction <add>, %9, %cst_8 [0] : vector<512x64xf32> to vector<64xf32>
    %11 = vector.shape_cast %10 : vector<64xf32> to vector<1x64xf32>
    %12 = vector.shape_cast %11 : vector<1x64xf32> to vector<1x64xf32>
    %13 = vector.broadcast %12 : vector<1x64xf32> to vector<8x64xf32>
    %c0_9 = arith.constant 0 : index
    %c0_10 = arith.constant 0 : index
    %14 = vector.load %arg5[%c0_9, %c0_10] : memref<8x64xf32, #tpu.memory_space<vmem>>, vector<8x64xf32>
    tpu.vector_store %arg5[%c0_9, %c0_10], %13 {strides = array<i32>} : memref<8x64xf32, #tpu.memory_space<vmem>>, vector<8x64xf32>,
    return
  }
  func.func @transform_0(%arg0: i32) -> (i32, i32) {
    %c0_i32 = arith.constant 0 : i32
    %c0_i32_0 = arith.constant 0 : i32
    return %arg0, %c0_i32 : i32, i32
  }
  func.func @transform_1(%arg0: i32) -> (i32, i32) {
    %c0_i32 = arith.constant 0 : i32
    %c0_i32_0 = arith.constant 0 : i32
    %c0_i32_1 = arith.constant 0 : i32
    return %c0_i32, %c0_i32_0 : i32, i32
  }
  func.func @transform_2(%arg0: i32) -> (i32, i32) {
    %c0_i32 = arith.constant 0 : i32
    %c0_i32_0 = arith.constant 0 : i32
    return %arg0, %c0_i32 : i32, i32
  }
  func.func @transform_3(%arg0: i32) -> (i32, i32) {
    %c0_i32 = arith.constant 0 : i32
    %c0_i32_0 = arith.constant 0 : i32
    return %arg0, %c0_i32 : i32, i32
  }
  func.func @transform_4(%arg0: i32) -> (i32, i32) {
    %c0_i32 = arith.constant 0 : i32
    %c0_i32_0 = arith.constant 0 : i32
    return %arg0, %c0_i32 : i32, i32
  }
}

</mosaic_0001>

<bundles_post_ra>
// kernel: conv_matmul.1
= control target key start
LH: loop header
LB: loop body
LE: loop exit
PB: predicated region body
PF: predicated region fallthrough
CT: control target
= control target key end

     0   :  { %vm92_vm0 = vcmask 883712   ;;  %vm285_vm1 = vcmask 1043456   ;;  %vm1395_vm2 = vmmov 1   ;;  %vm674_vm4 = vcmask 523264   ;;  %s2303_s1 = inlined_call_operand.vmem [shape: f32[108,64], index: 1, kind: input, shape index: {}]   ;;  %s2304_s0 = inlined_call_operand.vmem [shape: f32[512,108], index: 0, kind: input, shape index: {}]   ;;  %s2305_s2 = inlined_call_operand.vmem [shape: f32[512,64], index: 2, kind: output, shape index: {0}]   ;;  %s2306_s3 = inlined_call_operand.vmem [shape: f32[8,64], index: 3, kind: output, shape index: {1}]   ;;  %s2307_s4 = inlined_call_operand.vmem [shape: f32[8,64], index: 4, kind: output, shape index: {2}]  }
   0x1   :  { %v78_v0 = vld [vmem:[%s2303_s1] sm:$0xff]  ;;  %v79_v1 = vld [vmem:[%s2303_s1 + $0x8] sm:$0xff]  ;;  %v80_v2 = vld [vmem:[%s2303_s1 + $0x10] sm:$0xff] }
   0x2   :  { %v1350_v3 = vpack.c.bf16 %v79_v1, %v78_v0  ;;  %v81_v4 = vld [vmem:[%s2303_s1 + $0x18] sm:$0xff]  ;;  %v82_v6 = vld [vmem:[%s2303_s1 + $0x20] sm:$0xff]  ;;  %v83_v7 = vld [vmem:[%s2303_s1 + $0x28] sm:$0xff] }
   0x3   :  { %v1354_v5 = vpack.c.bf16 %v81_v4, %v80_v2  ;;  %v1358_v8 = vpack.c.bf16 %v83_v7, %v82_v6  ;;  %v14_v9 = vld [vmem:[%s2304_s0] sm:$0xff]  ;;  %v84_v10 = vld [vmem:[%s2303_s1 + $0x30] sm:$0xff]  ;;  %v85_v11 = vld [vmem:[%s2303_s1 + $0x38] sm:$0xff] }
   0x4   :  { %1351 = vmatprep.subr.bf16.mxu0 %v1350_v3  ;;  %1380 = vmatprep.subr.bf16.mxu1 %v1350_v3  ;;  %v1362_v12 = vpack.c.bf16 %v85_v11, %v84_v10  ;;  %v86_v13 = vld [vmem:[%s2303_s1 + $0x40] sm:$0xff]  ;;  %v87_v14 = vld [vmem:[%s2303_s1 + $0x48] sm:$0xff]  ;;  %v88_v16 = vld [vmem:[%s2303_s1 + $0x50] sm:$0xff] }
   0x5   :  { %1353 = vmatpush3.bf16.msra.mxu0 %v1350_v3  ;;  %1387 = vmatpush3.bf16.msra.mxu1 %v1350_v3  ;;  %v1366_v15 = vpack.c.bf16 %v87_v14, %v86_v13  ;;  %v89_v17 = vld [vmem:[%s2303_s1 + $0x58] sm:$0xff]  ;;  %v46_v18 = vld [vmem:[%s2304_s0 + $0x100] sm:$0xff]  ;;  %v91_v21 = vld [vmem:[%s2303_s1 + $0x68] sm:$0xf] }
   0x6   :  { %1355 = vmatprep.subr.bf16.mxu0 %v1354_v5  ;;  %1381 = vmatprep.subr.bf16.mxu1 %v1354_v5  ;;  %v1370_v19 = vpack.c.bf16 %v89_v17, %v88_v16  ;;  %v90_v20 = vld [vmem:[%s2303_s1 + $0x60] sm:$0xff]  ;;  %vm1375_vm3 = vmpackc.low %vm285_vm1, %vm1395_vm2  ;;  %v15_v23 = vld [vmem:[%s2304_s0 + $0x8] sm:$0xff] }
   0x7   :  { %1254 = vmatprep.mubr.msk.f32.mxu0 %vm92_vm0, %v14_v9  ;;  %1302 = vmatprep.mubr.msk.f32.mxu1 %vm92_vm0, %v46_v18  ;;  %v1374_v22 = vpack.c.bf16 %v91_v21, %v90_v20  ;;  %v47_v24 = vld [vmem:[%s2304_s0 + $0x108] sm:$0xff]  ;;  %v16_v25 = vld [vmem:[%s2304_s0 + $0x10] sm:$0xff]  ;;  %v17_v27 = vld [vmem:[%s2304_s0 + $0x18] sm:$0xff] }
   0x8   :  { %v48_v26 = vld [vmem:[%s2304_s0 + $0x110] sm:$0xff]  ;;  %v49_v28 = vld [vmem:[%s2304_s0 + $0x118] sm:$0xff]  ;;  %v18_v29 = vld [vmem:[%s2304_s0 + $0x20] sm:$0xff] }
   0x9   :  { %1357 = vmatpush3.bf16.msra.mxu0 %v1354_v5  ;;  %1388 = vmatpush3.bf16.msra.mxu1 %v1354_v5  ;;  %v50_v30 = vld [vmem:[%s2304_s0 + $0x120] sm:$0xff]  ;;  %v19_v31 = vld [vmem:[%s2304_s0 + $0x28] sm:$0xff]  ;;  %v20_v33 = vld [vmem:[%s2304_s0 + $0x30] sm:$0xff] }
   0xa   :  { %1359 = vmatprep.subr.bf16.mxu0 %v1358_v8  ;;  %1382 = vmatprep.subr.bf16.mxu1 %v1358_v8  ;;  %v51_v32 = vld [vmem:[%s2304_s0 + $0x128] sm:$0xff]  ;;  %v52_v34 = vld [vmem:[%s2304_s0 + $0x130] sm:$0xff]  ;;  %v21_v35 = vld [vmem:[%s2304_s0 + $0x38] sm:$0xff] }
   0xb   :  { %v53_v36 = vld [vmem:[%s2304_s0 + $0x138] sm:$0xff]  ;;  %v22_v37 = vld [vmem:[%s2304_s0 + $0x40] sm:$0xff]  ;;  %v23_v39 = vld [vmem:[%s2304_s0 + $0x48] sm:$0xff] }
   0xc   :  { %v54_v38 = vld [vmem:[%s2304_s0 + $0x140] sm:$0xff]  ;;  %v55_v40 = vld [vmem:[%s2304_s0 + $0x148] sm:$0xff]  ;;  %v24_v41 = vld [vmem:[%s2304_s0 + $0x50] sm:$0xff] }
   0xd   :  { %1361 = vmatpush3.bf16.msra.mxu0 %v1358_v8  ;;  %1389 = vmatpush3.bf16.msra.mxu1 %v1358_v8  ;;  %v56_v42 = vld [vmem:[%s2304_s0 + $0x150] sm:$0xff]  ;;  %v25_v43 = vld [vmem:[%s2304_s0 + $0x58] sm:$0xff]  ;;  %v26_v45 = vld [vmem:[%s2304_s0 + $0x60] sm:$0xff] }
   0xe   :  { %1363 = vmatprep.subr.bf16.mxu0 %v1362_v12  ;;  %1383 = vmatprep.subr.bf16.mxu1 %v1362_v12  ;;  %v57_v44 = vld [vmem:[%s2304_s0 + $0x158] sm:$0xff]  ;;  %v58_v46 = vld [vmem:[%s2304_s0 + $0x160] sm:$0xff]  ;;  %v27_v47 = vld [vmem:[%s2304_s0 + $0x68] sm:$0xff] }
   0xf   :  { %v59_v48 = vld [vmem:[%s2304_s0 + $0x168] sm:$0xff]  ;;  %v28_v49 = vld [vmem:[%s2304_s0 + $0x70] sm:$0xff]  ;;  %v29_v51 = vld [vmem:[%s2304_s0 + $0x78] sm:$0xff] }
  0x10   :  { %v60_v50 = vld [vmem:[%s2304_s0 + $0x170] sm:$0xff]  ;;  %v61_v52 = vld [vmem:[%s2304_s0 + $0x178] sm:$0xff]  ;;  %v30_v53 = vld [vmem:[%s2304_s0 + $0x80] sm:$0xff] }
  0x11   :  { %1365 = vmatpush3.bf16.msra.mxu0 %v1362_v12  ;;  %1390 = vmatpush3.bf16.msra.mxu1 %v1362_v12  ;;  %v62_v54 = vld [vmem:[%s2304_s0 + $0x180] sm:$0xff]  ;;  %v31_v55 = vld [vmem:[%s2304_s0 + $0x88] sm:$0xff]  ;;  %v32_v57 = vld [vmem:[%s2304_s0 + $0x90] sm:$0xff] }
  0x12   :  { %1367 = vmatprep.subr.bf16.mxu0 %v1366_v15  ;;  %1384 = vmatprep.subr.bf16.mxu1 %v1366_v15  ;;  %v63_v56 = vld [vmem:[%s2304_s0 + $0x188] sm:$0xff]  ;;  %v64_v58 = vld [vmem:[%s2304_s0 + $0x190] sm:$0xff]  ;;  %v33_v59 = vld [vmem:[%s2304_s0 + $0x98] sm:$0xff] }
  0x13   :  { %v65_v60 = vld [vmem:[%s2304_s0 + $0x198] sm:$0xff]  ;;  %v34_v61 = vld [vmem:[%s2304_s0 + $0xa0] sm:$0xff]  ;;  %v35_v63 = vld [vmem:[%s2304_s0 + $0xa8] sm:$0xff] }
  0x14   :  { %v66_v62 = vld [vmem:[%s2304_s0 + $0x1a0] sm:$0xff]  ;;  %v67_v0 = vld [vmem:[%s2304_s0 + $0x1a8] sm:$0xff]  ;;  %v36_v1 = vld [vmem:[%s2304_s0 + $0xb0] sm:$0xff] }
  0x15   :  { %1369 = vmatpush3.bf16.msra.mxu0 %v1366_v15  ;;  %1391 = vmatpush3.bf16.msra.mxu1 %v1366_v15  ;;  %v68_v2 = vld [vmem:[%s2304_s0 + $0x1b0] sm:$0xff]  ;;  %v37_v3 = vld [vmem:[%s2304_s0 + $0xb8] sm:$0xff]  ;;  %v38_v5 = vld [vmem:[%s2304_s0 + $0xc0] sm:$0xff] }
  0x16   :  { %1371 = vmatprep.subr.bf16.mxu0 %v1370_v19  ;;  %1385 = vmatprep.subr.bf16.mxu1 %v1370_v19  ;;  %v69_v4 = vld [vmem:[%s2304_s0 + $0x1b8] sm:$0xff]  ;;  %v70_v6 = vld [vmem:[%s2304_s0 + $0x1c0] sm:$0xff]  ;;  %v39_v7 = vld [vmem:[%s2304_s0 + $0xc8] sm:$0xff] }
  0x17   :  { %v71_v8 = vld [vmem:[%s2304_s0 + $0x1c8] sm:$0xff]  ;;  %v40_v9 = vld [vmem:[%s2304_s0 + $0xd0] sm:$0xff]  ;;  %v41_v11 = vld [vmem:[%s2304_s0 + $0xd8] sm:$0xff] }
  0x18   :  { %v72_v10 = vld [vmem:[%s2304_s0 + $0x1d0] sm:$0xff]  ;;  %v73_v12 = vld [vmem:[%s2304_s0 + $0x1d8] sm:$0xff]  ;;  %v42_v13 = vld [vmem:[%s2304_s0 + $0xe0] sm:$0xff] }
  0x19   :  { %1373 = vmatpush3.bf16.msra.mxu0 %v1370_v19  ;;  %1392 = vmatpush3.bf16.msra.mxu1 %v1370_v19  ;;  %v74_v14 = vld [vmem:[%s2304_s0 + $0x1e0] sm:$0xff]  ;;  %v43_v15 = vld [vmem:[%s2304_s0 + $0xe8] sm:$0xff]  ;;  %v44_v17 = vld [vmem:[%s2304_s0 + $0xf0] sm:$0xff] }
  0x1a   :  { %1376 = vmatprep.subr.msk.bf16.mxu0 %vm1375_vm3, %v1374_v22  ;;  %1386 = vmatprep.subr.msk.bf16.mxu1 %vm1375_vm3, %v1374_v22  ;;  %v75_v16 = vld [vmem:[%s2304_s0 + $0x1e8] sm:$0xff]  ;;  %v76_v18 = vld [vmem:[%s2304_s0 + $0x1f0] sm:$0xff]  ;;  %v45_v19 = vld [vmem:[%s2304_s0 + $0xf8] sm:$0xff] }
  0x1b   :  { %v77_v20 = vld [vmem:[%s2304_s0 + $0x1f8] sm:$0xff] }
  0x1d   :  { %1379 = vmatpush3.bf16.msk.msra.mxu0 %vm1375_vm3, %v1374_v22  ;;  %1393 = vmatpush3.bf16.msk.msra.mxu1 %vm1375_vm3, %v1374_v22 }
  0x20   :  { %1255 = vmatmul.mubr.msk.f32.vlgmr.msra.gmra.mrb[0].mxu0 %vm92_vm0, %v15_v23  ;;  %1303 = vmatmul.mubr.msk.f32.vlgmr.msra.gmra.mrb[0].mxu1 %vm92_vm0, %v47_v24 }
  0x21   :  { %1257 = vmatprep.mubr.msk.f32.mxu0 %vm92_vm0, %v16_v25  ;;  %1305 = vmatprep.mubr.msk.f32.mxu1 %vm92_vm0, %v48_v26 }
  0x24   :  { %1258 = vmatmul.mubr.msk.f32.gmra.mrb[2].mxu0 %vm92_vm0, %v17_v27  ;;  %1306 = vmatmul.mubr.msk.f32.gmra.mrb[2].mxu1 %vm92_vm0, %v49_v28 }
  0x25   :  { %1260 = vmatprep.mubr.msk.f32.mxu0 %vm92_vm0, %v18_v29  ;;  %1308 = vmatprep.mubr.msk.f32.mxu1 %vm92_vm0, %v50_v30 }
  0x28   :  { %1261 = vmatmul.mubr.msk.f32.gmra.mrb[4].mxu0 %vm92_vm0, %v19_v31  ;;  %1309 = vmatmul.mubr.msk.f32.gmra.mrb[4].mxu1 %vm92_vm0, %v51_v32 }
  0x29   :  { %1263 = vmatprep.mubr.msk.f32.mxu0 %vm92_vm0, %v20_v33  ;;  %1311 = vmatprep.mubr.msk.f32.mxu1 %vm92_vm0, %v52_v34 }
  0x2c   :  { %1264 = vmatmul.mubr.msk.f32.gmra.mrb[6].mxu0 %vm92_vm0, %v21_v35  ;;  %1312 = vmatmul.mubr.msk.f32.gmra.mrb[6].mxu1 %vm92_vm0, %v53_v36 }
  0x2d   :  { %1266 = vmatprep.mubr.msk.f32.mxu0 %vm92_vm0, %v22_v37  ;;  %1314 = vmatprep.mubr.msk.f32.mxu1 %vm92_vm0, %v54_v38 }
  0x30   :  { %1267 = vmatmul.mubr.msk.f32.gmra.mrb[8].mxu0 %vm92_vm0, %v23_v39  ;;  %1315 = vmatmul.mubr.msk.f32.gmra.mrb[8].mxu1 %vm92_vm0, %v55_v40 }
  0x31   :  { %1269 = vmatprep.mubr.msk.f32.mxu0 %vm92_vm0, %v24_v41  ;;  %1317 = vmatprep.mubr.msk.f32.mxu1 %vm92_vm0, %v56_v42 }
  0x34   :  { %1270 = vmatmul.mubr.msk.f32.gmra.mrb[10].mxu0 %vm92_vm0, %v25_v43  ;;  %1318 = vmatmul.mubr.msk.f32.gmra.mrb[10].mxu1 %vm92_vm0, %v57_v44 }
  0x35   :  { %1272 = vmatprep.mubr.msk.f32.mxu0 %vm92_vm0, %v26_v45  ;;  %1320 = vmatprep.mubr.msk.f32.mxu1 %vm92_vm0, %v58_v46 }
  0x38   :  { %1273 = vmatmul.mubr.msk.f32.gmra.mrb[12].mxu0 %vm92_vm0, %v27_v47  ;;  %1321 = vmatmul.mubr.msk.f32.gmra.mrb[12].mxu1 %vm92_vm0, %v59_v48 }
  0x39   :  { %1275 = vmatprep.mubr.msk.f32.mxu0 %vm92_vm0, %v28_v49  ;;  %1323 = vmatprep.mubr.msk.f32.mxu1 %vm92_vm0, %v60_v50 }
  0x3c   :  { %1276 = vmatmul.mubr.msk.f32.gmra.mrb[14].mxu0 %vm92_vm0, %v29_v51  ;;  %1324 = vmatmul.mubr.msk.f32.gmra.mrb[14].mxu1 %vm92_vm0, %v61_v52 }
  0x3d   :  { %1278 = vmatprep.mubr.msk.f32.mxu0 %vm92_vm0, %v30_v53  ;;  %1326 = vmatprep.mubr.msk.f32.mxu1 %vm92_vm0, %v62_v54 }
  0x40   :  { %1279 = vmatmul.mubr.msk.f32.gmra.mrb[16].mxu0 %vm92_vm0, %v31_v55  ;;  %1327 = vmatmul.mubr.msk.f32.gmra.mrb[16].mxu1 %vm92_vm0, %v63_v56 }
  0x41   :  { %1281 = vmatprep.mubr.msk.f32.mxu0 %vm92_vm0, %v32_v57  ;;  %1329 = vmatprep.mubr.msk.f32.mxu1 %vm92_vm0, %v64_v58 }
  0x44   :  { %1282 = vmatmul.mubr.msk.f32.gmra.mrb[18].mxu0 %vm92_vm0, %v33_v59  ;;  %1330 = vmatmul.mubr.msk.f32.gmra.mrb[18].mxu1 %vm92_vm0, %v65_v60 }
  0x45   :  { %1284 = vmatprep.mubr.msk.f32.mxu0 %vm92_vm0, %v34_v61  ;;  %1332 = vmatprep.mubr.msk.f32.mxu1 %vm92_vm0, %v66_v62 }
  0x48   :  { %1285 = vmatmul.mubr.msk.f32.gmra.mrb[20].mxu0 %vm92_vm0, %v35_v63  ;;  %1333 = vmatmul.mubr.msk.f32.gmra.mrb[20].mxu1 %vm92_vm0, %v67_v0 }
  0x49   :  { %1287 = vmatprep.mubr.msk.f32.mxu0 %vm92_vm0, %v36_v1  ;;  %1335 = vmatprep.mubr.msk.f32.mxu1 %vm92_vm0, %v68_v2 }
  0x4c   :  { %1288 = vmatmul.mubr.msk.f32.gmra.mrb[22].mxu0 %vm92_vm0, %v37_v3  ;;  %1336 = vmatmul.mubr.msk.f32.gmra.mrb[22].mxu1 %vm92_vm0, %v69_v4 }
  0x4d   :  { %1290 = vmatprep.mubr.msk.f32.mxu0 %vm92_vm0, %v38_v5  ;;  %1338 = vmatprep.mubr.msk.f32.mxu1 %vm92_vm0, %v70_v6 }
  0x50   :  { %1291 = vmatmul.mubr.msk.f32.gmra.mrb[24].mxu0 %vm92_vm0, %v39_v7  ;;  %1339 = vmatmul.mubr.msk.f32.gmra.mrb[24].mxu1 %vm92_vm0, %v71_v8 }
  0x51   :  { %1293 = vmatprep.mubr.msk.f32.mxu0 %vm92_vm0, %v40_v9  ;;  %1341 = vmatprep.mubr.msk.f32.mxu1 %vm92_vm0, %v72_v10 }
  0x54   :  { %1294 = vmatmul.mubr.msk.f32.gmra.mrb[26].mxu0 %vm92_vm0, %v41_v11  ;;  %1342 = vmatmul.mubr.msk.f32.gmra.mrb[26].mxu1 %vm92_vm0, %v73_v12 }
  0x55   :  { %1296 = vmatprep.mubr.msk.f32.mxu0 %vm92_vm0, %v42_v13  ;;  %1344 = vmatprep.mubr.msk.f32.mxu1 %vm92_vm0, %v74_v14 }
  0x58   :  { %1297 = vmatmul.mubr.msk.f32.gmra.mrb[28].mxu0 %vm92_vm0, %v43_v15  ;;  %1345 = vmatmul.mubr.msk.f32.gmra.mrb[28].mxu1 %vm92_vm0, %v75_v16 }
  0x59   :  { %1299 = vmatprep.mubr.msk.f32.mxu0 %vm92_vm0, %v44_v17  ;;  %1347 = vmatprep.mubr.msk.f32.mxu1 %vm92_vm0, %v76_v18 }
  0x5c   :  { %1300 = vmatmul.mubr.msk.f32.gmra.mrb[30].mxu0 %vm92_vm0, %v45_v19  ;;  %1348 = vmatmul.mubr.msk.f32.gmra.mrb[30].mxu1 %vm92_vm0, %v77_v20 }
  0xf3   :  { %v1256_v21 = vpop.f32.mrb[0].mxu0  ;;  %v1719_v22 = vpop.f32.mrb[0].mxu1 }
  0xf4   :  { %676 = vst.msk [vmem:[%s2305_s2 + $0x8] sm:$0xff] %vm674_vm4, %v1256_v21  ;;  %v740_v23 = vsel %vm674_vm4, %v1256_v21, 0.0  ;;  %v874_v24 = vmul.f32 %v1256_v21, %v1256_v21  ;;  %v355_v25 = vpop.f32.mrb[1].mxu0  ;;  %708 = vst.msk [vmem:[%s2305_s2 + $0x108] sm:$0xff] %vm674_vm4, %v1719_v22  ;;  %v1731_v26 = vpop.f32.mrb[1].mxu1 }
  0xf5   :  { %675 = vst.msk [vmem:[%s2305_s2] sm:$0xff] %vm674_vm4, %v355_v25  ;;  %v739_v27 = vsel %vm674_vm4, %v355_v25, 0.0  ;;  %v873_v28 = vmul.f32 %v355_v25, %v355_v25  ;;  %707 = vst.msk [vmem:[%s2305_s2 + $0x100] sm:$0xff] %vm674_vm4, %v1731_v26 }
  0xf6   :  { %v938_v29 = vsel %vm674_vm4, %v874_v24, 0.0  ;;  %v741_v30 = vadd.f32 %v740_v23, %v739_v27 }
  0xf7   :  { %v937_v31 = vsel %vm674_vm4, %v873_v28, 0.0  ;;  %v1259_v32 = vpop.f32.mrb[2].mxu0  ;;  %v1745_v33 = vpop.f32.mrb[2].mxu1 }
  0xf8   :  { %v939_v34 = vadd.f32 %v938_v29, %v937_v31  ;;  %678 = vst.msk [vmem:[%s2305_s2 + $0x18] sm:$0xff] %vm674_vm4, %v1259_v32  ;;  %v365_v35 = vpop.f32.mrb[3].mxu0  ;;  %710 = vst.msk [vmem:[%s2305_s2 + $0x118] sm:$0xff] %vm674_vm4, %v1745_v33  ;;  %v1756_v36 = vpop.f32.mrb[3].mxu1  ;;  %v876_v37 = vmul.f32 %v1259_v32, %v1259_v32  ;;  %v744_v41 = vsel %vm674_vm4, %v1259_v32, 0.0 }
  0xf9   :  { %677 = vst.msk [vmem:[%s2305_s2 + $0x10] sm:$0xff] %vm674_vm4, %v365_v35  ;;  %v742_v38 = vsel %vm674_vm4, %v365_v35, 0.0  ;;  %v875_v39 = vmul.f32 %v365_v35, %v365_v35  ;;  %709 = vst.msk [vmem:[%s2305_s2 + $0x110] sm:$0xff] %vm674_vm4, %v1756_v36 }
  0xfa   :  { %v743_v40 = vadd.f32 %v742_v38, %v741_v30  ;;  %v942_v49 = vsel %vm674_vm4, %v876_v37, 0.0 }
  0xfb   :  { %v940_v42 = vsel %vm674_vm4, %v875_v39, 0.0  ;;  %v1262_v43 = vpop.f32.mrb[4].mxu0  ;;  %v1770_v44 = vpop.f32.mrb[4].mxu1 }
  0xfc   :  { %v941_v45 = vadd.f32 %v940_v42, %v939_v34  ;;  %680 = vst.msk [vmem:[%s2305_s2 + $0x28] sm:$0xff] %vm674_vm4, %v1262_v43  ;;  %v375_v46 = vpop.f32.mrb[5].mxu0  ;;  %v745_v47 = vadd.f32 %v744_v41, %v743_v40  ;;  %712 = vst.msk [vmem:[%s2305_s2 + $0x128] sm:$0xff] %vm674_vm4, %v1770_v44  ;;  %v1781_v48 = vpop.f32.mrb[5].mxu1  ;;  %v878_v50 = vmul.f32 %v1262_v43, %v1262_v43  ;;  %v748_v55 = vsel %vm674_vm4, %v1262_v43, 0.0 }
  0xfd   :  { %679 = vst.msk [vmem:[%s2305_s2 + $0x20] sm:$0xff] %vm674_vm4, %v375_v46  ;;  %v746_v51 = vsel %vm674_vm4, %v375_v46, 0.0  ;;  %v877_v52 = vmul.f32 %v375_v46, %v375_v46  ;;  %711 = vst.msk [vmem:[%s2305_s2 + $0x120] sm:$0xff] %vm674_vm4, %v1781_v48 }
  0xfe   :  { %v747_v53 = vadd.f32 %v746_v51, %v745_v47  ;;  %v943_v54 = vadd.f32 %v942_v49, %v941_v45  ;;  %v946_v63 = vsel %vm674_vm4, %v878_v50, 0.0 }
  0xff   :  { %v944_v56 = vsel %vm674_vm4, %v877_v52, 0.0  ;;  %v1265_v57 = vpop.f32.mrb[6].mxu0  ;;  %v1796_v58 = vpop.f32.mrb[6].mxu1 }
 0x100   :  { %v945_v59 = vadd.f32 %v944_v56, %v943_v54  ;;  %682 = vst.msk [vmem:[%s2305_s2 + $0x38] sm:$0xff] %vm674_vm4, %v1265_v57  ;;  %v385_v60 = vpop.f32.mrb[7].mxu0  ;;  %v749_v61 = vadd.f32 %v748_v55, %v747_v53  ;;  %714 = vst.msk [vmem:[%s2305_s2 + $0x138] sm:$0xff] %vm674_vm4, %v1796_v58  ;;  %v1807_v62 = vpop.f32.mrb[7].mxu1  ;;  %v880_v0 = vmul.f32 %v1265_v57, %v1265_v57  ;;  %v752_v5 = vsel %vm674_vm4, %v1265_v57, 0.0 }
 0x101   :  { %681 = vst.msk [vmem:[%s2305_s2 + $0x30] sm:$0xff] %vm674_vm4, %v385_v60  ;;  %v750_v1 = vsel %vm674_vm4, %v385_v60, 0.0  ;;  %v879_v2 = vmul.f32 %v385_v60, %v385_v60  ;;  %713 = vst.msk [vmem:[%s2305_s2 + $0x130] sm:$0xff] %vm674_vm4, %v1807_v62 }
 0x102   :  { %v751_v3 = vadd.f32 %v750_v1, %v749_v61  ;;  %v947_v4 = vadd.f32 %v946_v63, %v945_v59  ;;  %v950_v13 = vsel %vm674_vm4, %v880_v0, 0.0 }
 0x103   :  { %v948_v6 = vsel %vm674_vm4, %v879_v2, 0.0  ;;  %v1268_v7 = vpop.f32.mrb[8].mxu0  ;;  %v1822_v8 = vpop.f32.mrb[8].mxu1 }
 0x104   :  { %v949_v9 = vadd.f32 %v948_v6, %v947_v4  ;;  %684 = vst.msk [vmem:[%s2305_s2 + $0x48] sm:$0xff] %vm674_vm4, %v1268_v7  ;;  %v395_v10 = vpop.f32.mrb[9].mxu0  ;;  %v753_v11 = vadd.f32 %v752_v5, %v751_v3  ;;  %716 = vst.msk [vmem:[%s2305_s2 + $0x148] sm:$0xff] %vm674_vm4, %v1822_v8  ;;  %v1833_v12 = vpop.f32.mrb[9].mxu1  ;;  %v882_v14 = vmul.f32 %v1268_v7, %v1268_v7  ;;  %v756_v19 = vsel %vm674_vm4, %v1268_v7, 0.0 }
 0x105   :  { %683 = vst.msk [vmem:[%s2305_s2 + $0x40] sm:$0xff] %vm674_vm4, %v395_v10  ;;  %v754_v15 = vsel %vm674_vm4, %v395_v10, 0.0  ;;  %v881_v16 = vmul.f32 %v395_v10, %v395_v10  ;;  %715 = vst.msk [vmem:[%s2305_s2 + $0x140] sm:$0xff] %vm674_vm4, %v1833_v12 }
 0x106   :  { %v755_v17 = vadd.f32 %v754_v15, %v753_v11  ;;  %v951_v18 = vadd.f32 %v950_v13, %v949_v9  ;;  %v954_v29 = vsel %vm674_vm4, %v882_v14, 0.0 }
 0x107   :  { %v952_v20 = vsel %vm674_vm4, %v881_v16, 0.0  ;;  %v1271_v21 = vpop.f32.mrb[10].mxu0  ;;  %v1848_v23 = vpop.f32.mrb[10].mxu1 }
 0x108   :  { %v953_v24 = vadd.f32 %v952_v20, %v951_v18  ;;  %686 = vst.msk [vmem:[%s2305_s2 + $0x58] sm:$0xff] %vm674_vm4, %v1271_v21  ;;  %v405_v25 = vpop.f32.mrb[11].mxu0  ;;  %v757_v27 = vadd.f32 %v756_v19, %v755_v17  ;;  %718 = vst.msk [vmem:[%s2305_s2 + $0x158] sm:$0xff] %vm674_vm4, %v1848_v23  ;;  %v1859_v28 = vpop.f32.mrb[11].mxu1  ;;  %v884_v30 = vmul.f32 %v1271_v21, %v1271_v21  ;;  %v760_v37 = vsel %vm674_vm4, %v1271_v21, 0.0 }
 0x109   :  { %685 = vst.msk [vmem:[%s2305_s2 + $0x50] sm:$0xff] %vm674_vm4, %v405_v25  ;;  %v758_v31 = vsel %vm674_vm4, %v405_v25, 0.0  ;;  %v883_v32 = vmul.f32 %v405_v25, %v405_v25  ;;  %717 = vst.msk [vmem:[%s2305_s2 + $0x150] sm:$0xff] %vm674_vm4, %v1859_v28 }
 0x10a   :  { %v759_v34 = vadd.f32 %v758_v31, %v757_v27  ;;  %v955_v35 = vadd.f32 %v954_v29, %v953_v24  ;;  %v958_v46 = vsel %vm674_vm4, %v884_v30, 0.0 }
 0x10b   :  { %v956_v38 = vsel %vm674_vm4, %v883_v32, 0.0  ;;  %v1274_v39 = vpop.f32.mrb[12].mxu0  ;;  %v1874_v40 = vpop.f32.mrb[12].mxu1 }
 0x10c   :  { %v957_v41 = vadd.f32 %v956_v38, %v955_v35  ;;  %688 = vst.msk [vmem:[%s2305_s2 + $0x68] sm:$0xff] %vm674_vm4, %v1274_v39  ;;  %v415_v42 = vpop.f32.mrb[13].mxu0  ;;  %v761_v43 = vadd.f32 %v760_v37, %v759_v34  ;;  %720 = vst.msk [vmem:[%s2305_s2 + $0x168] sm:$0xff] %vm674_vm4, %v1874_v40  ;;  %v1885_v45 = vpop.f32.mrb[13].mxu1  ;;  %v886_v47 = vmul.f32 %v1274_v39, %v1274_v39  ;;  %v764_v53 = vsel %vm674_vm4, %v1274_v39, 0.0 }
 0x10d   :  { %687 = vst.msk [vmem:[%s2305_s2 + $0x60] sm:$0xff] %vm674_vm4, %v415_v42  ;;  %v762_v49 = vsel %vm674_vm4, %v415_v42, 0.0  ;;  %v885_v50 = vmul.f32 %v415_v42, %v415_v42  ;;  %719 = vst.msk [vmem:[%s2305_s2 + $0x160] sm:$0xff] %vm674_vm4, %v1885_v45 }
 0x10e   :  { %v763_v51 = vadd.f32 %v762_v49, %v761_v43  ;;  %v959_v52 = vadd.f32 %v958_v46, %v957_v41  ;;  %v962_v63 = vsel %vm674_vm4, %v886_v47, 0.0 }
 0x10f   :  { %v960_v54 = vsel %vm674_vm4, %v885_v50, 0.0  ;;  %v1277_v55 = vpop.f32.mrb[14].mxu0  ;;  %v1900_v56 = vpop.f32.mrb[14].mxu1 }
 0x110   :  { %v961_v57 = vadd.f32 %v960_v54, %v959_v52  ;;  %690 = vst.msk [vmem:[%s2305_s2 + $0x78] sm:$0xff] %vm674_vm4, %v1277_v55  ;;  %v425_v59 = vpop.f32.mrb[15].mxu0  ;;  %v765_v60 = vadd.f32 %v764_v53, %v763_v51  ;;  %722 = vst.msk [vmem:[%s2305_s2 + $0x178] sm:$0xff] %vm674_vm4, %v1900_v56  ;;  %v1911_v61 = vpop.f32.mrb[15].mxu1  ;;  %v888_v0 = vmul.f32 %v1277_v55, %v1277_v55  ;;  %v768_v5 = vsel %vm674_vm4, %v1277_v55, 0.0 }
 0x111   :  { %689 = vst.msk [vmem:[%s2305_s2 + $0x70] sm:$0xff] %vm674_vm4, %v425_v59  ;;  %v766_v1 = vsel %vm674_vm4, %v425_v59, 0.0  ;;  %v887_v2 = vmul.f32 %v425_v59, %v425_v59  ;;  %721 = vst.msk [vmem:[%s2305_s2 + $0x170] sm:$0xff] %vm674_vm4, %v1911_v61 }
 0x112   :  { %v767_v3 = vadd.f32 %v766_v1, %v765_v60  ;;  %v963_v4 = vadd.f32 %v962_v63, %v961_v57  ;;  %v966_v15 = vsel %vm674_vm4, %v888_v0, 0.0 }
 0x113   :  { %v964_v6 = vsel %vm674_vm4, %v887_v2, 0.0  ;;  %v1280_v7 = vpop.f32.mrb[16].mxu0  ;;  %v1926_v9 = vpop.f32.mrb[16].mxu1 }
 0x114   :  { %v965_v10 = vadd.f32 %v964_v6, %v963_v4  ;;  %692 = vst.msk [vmem:[%s2305_s2 + $0x88] sm:$0xff] %vm674_vm4, %v1280_v7  ;;  %v435_v11 = vpop.f32.mrb[17].mxu0  ;;  %v769_v13 = vadd.f32 %v768_v5, %v767_v3  ;;  %724 = vst.msk [vmem:[%s2305_s2 + $0x188] sm:$0xff] %vm674_vm4, %v1926_v9  ;;  %v1937_v14 = vpop.f32.mrb[17].mxu1  ;;  %v890_v16 = vmul.f32 %v1280_v7, %v1280_v7  ;;  %v772_v21 = vsel %vm674_vm4, %v1280_v7, 0.0 }
 0x115   :  { %691 = vst.msk [vmem:[%s2305_s2 + $0x80] sm:$0xff] %vm674_vm4, %v435_v11  ;;  %v770_v17 = vsel %vm674_vm4, %v435_v11, 0.0  ;;  %v889_v18 = vmul.f32 %v435_v11, %v435_v11  ;;  %723 = vst.msk [vmem:[%s2305_s2 + $0x180] sm:$0xff] %vm674_vm4, %v1937_v14 }
 0x116   :  { %v771_v19 = vadd.f32 %v770_v17, %v769_v13  ;;  %v967_v20 = vadd.f32 %v966_v15, %v965_v10  ;;  %v970_v34 = vsel %vm674_vm4, %v890_v16, 0.0 }
 0x117   :  { %v968_v24 = vsel %vm674_vm4, %v889_v18, 0.0  ;;  %v1283_v25 = vpop.f32.mrb[18].mxu0  ;;  %v1952_v27 = vpop.f32.mrb[18].mxu1 }
 0x118   :  { %v969_v29 = vadd.f32 %v968_v24, %v967_v20  ;;  %694 = vst.msk [vmem:[%s2305_s2 + $0x98] sm:$0xff] %vm674_vm4, %v1283_v25  ;;  %v445_v30 = vpop.f32.mrb[19].mxu0  ;;  %v773_v31 = vadd.f32 %v772_v21, %v771_v19  ;;  %726 = vst.msk [vmem:[%s2305_s2 + $0x198] sm:$0xff] %vm674_vm4, %v1952_v27  ;;  %v1963_v32 = vpop.f32.mrb[19].mxu1  ;;  %v892_v35 = vmul.f32 %v1283_v25, %v1283_v25  ;;  %v776_v42 = vsel %vm674_vm4, %v1283_v25, 0.0 }
 0x119   :  { %693 = vst.msk [vmem:[%s2305_s2 + $0x90] sm:$0xff] %vm674_vm4, %v445_v30  ;;  %v774_v37 = vsel %vm674_vm4, %v445_v30, 0.0  ;;  %v891_v38 = vmul.f32 %v445_v30, %v445_v30  ;;  %725 = vst.msk [vmem:[%s2305_s2 + $0x190] sm:$0xff] %vm674_vm4, %v1963_v32 }
 0x11a   :  { %v775_v39 = vadd.f32 %v774_v37, %v773_v31  ;;  %v971_v41 = vadd.f32 %v970_v34, %v969_v29  ;;  %v974_v53 = vsel %vm674_vm4, %v892_v35, 0.0 }
 0x11b   :  { %v972_v43 = vsel %vm674_vm4, %v891_v38, 0.0  ;;  %v1286_v46 = vpop.f32.mrb[20].mxu0  ;;  %v1978_v47 = vpop.f32.mrb[20].mxu1 }
 0x11c   :  { %v973_v49 = vadd.f32 %v972_v43, %v971_v41  ;;  %696 = vst.msk [vmem:[%s2305_s2 + $0xa8] sm:$0xff] %vm674_vm4, %v1286_v46  ;;  %v455_v50 = vpop.f32.mrb[21].mxu0  ;;  %v777_v51 = vadd.f32 %v776_v42, %v775_v39  ;;  %728 = vst.msk [vmem:[%s2305_s2 + $0x1a8] sm:$0xff] %vm674_vm4, %v1978_v47  ;;  %v1989_v52 = vpop.f32.mrb[21].mxu1  ;;  %v894_v54 = vmul.f32 %v1286_v46, %v1286_v46  ;;  %v780_v63 = vsel %vm674_vm4, %v1286_v46, 0.0 }
 0x11d   :  { %695 = vst.msk [vmem:[%s2305_s2 + $0xa0] sm:$0xff] %vm674_vm4, %v455_v50  ;;  %v778_v55 = vsel %vm674_vm4, %v455_v50, 0.0  ;;  %v893_v57 = vmul.f32 %v455_v50, %v455_v50  ;;  %727 = vst.msk [vmem:[%s2305_s2 + $0x1a0] sm:$0xff] %vm674_vm4, %v1989_v52 }
 0x11e   :  { %v779_v59 = vadd.f32 %v778_v55, %v777_v51  ;;  %v975_v60 = vadd.f32 %v974_v53, %v973_v49  ;;  %v978_v7 = vsel %vm674_vm4, %v894_v54, 0.0 }
 0x11f   :  { %v976_v0 = vsel %vm674_vm4, %v893_v57, 0.0  ;;  %v1289_v1 = vpop.f32.mrb[22].mxu0  ;;  %v2004_v2 = vpop.f32.mrb[22].mxu1 }
 0x120   :  { %v977_v3 = vadd.f32 %v976_v0, %v975_v60  ;;  %698 = vst.msk [vmem:[%s2305_s2 + $0xb8] sm:$0xff] %vm674_vm4, %v1289_v1  ;;  %v465_v4 = vpop.f32.mrb[23].mxu0  ;;  %v781_v5 = vadd.f32 %v780_v63, %v779_v59  ;;  %730 = vst.msk [vmem:[%s2305_s2 + $0x1b8] sm:$0xff] %vm674_vm4, %v2004_v2  ;;  %v2015_v6 = vpop.f32.mrb[23].mxu1  ;;  %v896_v10 = vmul.f32 %v1289_v1, %v1289_v1  ;;  %v784_v17 = vsel %vm674_vm4, %v1289_v1, 0.0 }
 0x121   :  { %697 = vst.msk [vmem:[%s2305_s2 + $0xb0] sm:$0xff] %vm674_vm4, %v465_v4  ;;  %v782_v11 = vsel %vm674_vm4, %v465_v4, 0.0  ;;  %v895_v13 = vmul.f32 %v465_v4, %v465_v4  ;;  %729 = vst.msk [vmem:[%s2305_s2 + $0x1b0] sm:$0xff] %vm674_vm4, %v2015_v6 }
 0x122   :  { %v783_v15 = vadd.f32 %v782_v11, %v781_v5  ;;  %v979_v16 = vadd.f32 %v978_v7, %v977_v3  ;;  %v982_v30 = vsel %vm674_vm4, %v896_v10, 0.0 }
 0x123   :  { %v980_v18 = vsel %vm674_vm4, %v895_v13, 0.0  ;;  %v1292_v19 = vpop.f32.mrb[24].mxu0  ;;  %v2030_v20 = vpop.f32.mrb[24].mxu1 }
 0x124   :  { %v981_v21 = vadd.f32 %v980_v18, %v979_v16  ;;  %700 = vst.msk [vmem:[%s2305_s2 + $0xc8] sm:$0xff] %vm674_vm4, %v1292_v19  ;;  %v475_v24 = vpop.f32.mrb[25].mxu0  ;;  %v785_v25 = vadd.f32 %v784_v17, %v783_v15  ;;  %732 = vst.msk [vmem:[%s2305_s2 + $0x1c8] sm:$0xff] %vm674_vm4, %v2030_v20  ;;  %v2041_v29 = vpop.f32.mrb[25].mxu1  ;;  %v898_v31 = vmul.f32 %v1292_v19, %v1292_v19  ;;  %v788_v39 = vsel %vm674_vm4, %v1292_v19, 0.0 }
 0x125   :  { %699 = vst.msk [vmem:[%s2305_s2 + $0xc0] sm:$0xff] %vm674_vm4, %v475_v24  ;;  %v786_v34 = vsel %vm674_vm4, %v475_v24, 0.0  ;;  %v897_v35 = vmul.f32 %v475_v24, %v475_v24  ;;  %731 = vst.msk [vmem:[%s2305_s2 + $0x1c0] sm:$0xff] %vm674_vm4, %v2041_v29 }
 0x126   :  { %v787_v37 = vadd.f32 %v786_v34, %v785_v25  ;;  %v983_v38 = vadd.f32 %v982_v30, %v981_v21  ;;  %v986_v53 = vsel %vm674_vm4, %v898_v31, 0.0 }
 0x127   :  { %v984_v41 = vsel %vm674_vm4, %v897_v35, 0.0  ;;  %v1295_v42 = vpop.f32.mrb[26].mxu0  ;;  %v2056_v43 = vpop.f32.mrb[26].mxu1  ;;  %v905_v35 = vmul.f32 %v1731_v26, %v1731_v26 }
 0x128   :  { %v985_v46 = vadd.f32 %v984_v41, %v983_v38  ;;  %702 = vst.msk [vmem:[%s2305_s2 + $0xd8] sm:$0xff] %vm674_vm4, %v1295_v42  ;;  %v485_v49 = vpop.f32.mrb[27].mxu0  ;;  %v789_v50 = vadd.f32 %v788_v39, %v787_v37  ;;  %734 = vst.msk [vmem:[%s2305_s2 + $0x1d8] sm:$0xff] %vm674_vm4, %v2056_v43  ;;  %v2067_v51 = vpop.f32.mrb[27].mxu1  ;;  %v900_v54 = vmul.f32 %v1295_v42, %v1295_v42  ;;  %v792_v63 = vsel %vm674_vm4, %v1295_v42, 0.0 }
 0x129   :  { %701 = vst.msk [vmem:[%s2305_s2 + $0xd0] sm:$0xff] %vm674_vm4, %v485_v49  ;;  %v790_v55 = vsel %vm674_vm4, %v485_v49, 0.0  ;;  %v899_v57 = vmul.f32 %v485_v49, %v485_v49  ;;  %733 = vst.msk [vmem:[%s2305_s2 + $0x1d0] sm:$0xff] %vm674_vm4, %v2067_v51 }
 0x12a   :  { %v791_v59 = vadd.f32 %v790_v55, %v789_v50  ;;  %v987_v60 = vadd.f32 %v986_v53, %v985_v46  ;;  %v990_v11 = vsel %vm674_vm4, %v900_v54, 0.0  ;;  %v802_v54 = vsel %vm674_vm4, %v1731_v26, 0.0 }
 0x12b   :  { %v988_v0 = vsel %vm674_vm4, %v899_v57, 0.0  ;;  %v1298_v1 = vpop.f32.mrb[28].mxu0  ;;  %v2082_v3 = vpop.f32.mrb[28].mxu1  ;;  %v806_v26 = vsel %vm674_vm4, %v1756_v36, 0.0 }
 0x12c   :  { %v989_v4 = vadd.f32 %v988_v0, %v987_v60  ;;  %704 = vst.msk [vmem:[%s2305_s2 + $0xe8] sm:$0xff] %vm674_vm4, %v1298_v1  ;;  %v495_v5 = vpop.f32.mrb[29].mxu0  ;;  %v793_v7 = vadd.f32 %v792_v63, %v791_v59  ;;  %736 = vst.msk [vmem:[%s2305_s2 + $0x1e8] sm:$0xff] %vm674_vm4, %v2082_v3  ;;  %v2093_v10 = vpop.f32.mrb[29].mxu1  ;;  %v902_v13 = vmul.f32 %v1298_v1, %v1298_v1  ;;  %v796_v19 = vsel %vm674_vm4, %v1298_v1, 0.0 }
 0x12d   :  { %703 = vst.msk [vmem:[%s2305_s2 + $0xe0] sm:$0xff] %vm674_vm4, %v495_v5  ;;  %v794_v15 = vsel %vm674_vm4, %v495_v5, 0.0  ;;  %v901_v16 = vmul.f32 %v495_v5, %v495_v5  ;;  %735 = vst.msk [vmem:[%s2305_s2 + $0x1e0] sm:$0xff] %vm674_vm4, %v2093_v10  ;;  %v906_v60 = vmul.f32 %v1719_v22, %v1719_v22  ;;  %v1000_v63 = vsel %vm674_vm4, %v905_v35, 0.0 }
 0x12e   :  { %v795_v17 = vadd.f32 %v794_v15, %v793_v7  ;;  %v991_v18 = vadd.f32 %v990_v11, %v989_v4  ;;  %v994_v38 = vsel %vm674_vm4, %v902_v13, 0.0  ;;  %v907_v0 = vmul.f32 %v1756_v36, %v1756_v36 }
 0x12f   :  { %v992_v21 = vsel %vm674_vm4, %v901_v16, 0.0  ;;  %v1301_v24 = vpop.f32.mrb[30].mxu0  ;;  %v2108_v25 = vpop.f32.mrb[30].mxu1  ;;  %v804_v5 = vsel %vm674_vm4, %v1719_v22, 0.0  ;;  %v1002_v13 = vsel %vm674_vm4, %v906_v60, 0.0  ;;  %v908_v15 = vmul.f32 %v1745_v33, %v1745_v33 }
 0x130   :  { %v993_v30 = vadd.f32 %v992_v21, %v991_v18  ;;  %706 = vst.msk [vmem:[%s2305_s2 + $0xf8] sm:$0xff] %vm674_vm4, %v1301_v24  ;;  %v505_v31 = vpop.f32.mrb[31].mxu0  ;;  %v797_v34 = vadd.f32 %v796_v19, %v795_v17  ;;  %738 = vst.msk [vmem:[%s2305_s2 + $0x1f8] sm:$0xff] %vm674_vm4, %v2108_v25  ;;  %v2121_v37 = vpop.f32.mrb[31].mxu1  ;;  %v904_v39 = vmul.f32 %v1301_v24, %v1301_v24  ;;  %v800_v50 = vsel %vm674_vm4, %v1301_v24, 0.0 }
 0x131   :  { %705 = vst.msk [vmem:[%s2305_s2 + $0xf0] sm:$0xff] %vm674_vm4, %v505_v31  ;;  %v798_v41 = vsel %vm674_vm4, %v505_v31, 0.0  ;;  %v903_v42 = vmul.f32 %v505_v31, %v505_v31  ;;  %737 = vst.msk [vmem:[%s2305_s2 + $0x1f0] sm:$0xff] %vm674_vm4, %v2121_v37  ;;  %v1004_v16 = vsel %vm674_vm4, %v907_v0, 0.0  ;;  %v909_v17 = vmul.f32 %v1781_v48, %v1781_v48 }
 0x132   :  { %v799_v46 = vadd.f32 %v798_v41, %v797_v34  ;;  %v995_v49 = vadd.f32 %v994_v38, %v993_v30  ;;  %v998_v59 = vsel %vm674_vm4, %v904_v39, 0.0  ;;  %v808_v22 = vsel %vm674_vm4, %v1745_v33, 0.0 }
 0x133   :  { %v996_v53 = vsel %vm674_vm4, %v903_v42, 0.0  ;;  %v810_v36 = vsel %vm674_vm4, %v1781_v48, 0.0  ;;  %v1006_v30 = vsel %vm674_vm4, %v908_v15, 0.0  ;;  %v910_v31 = vmul.f32 %v1770_v44, %v1770_v44 }
 0x134   :  { %v801_v55 = vadd.f32 %v800_v50, %v799_v46  ;;  %v997_v57 = vadd.f32 %v996_v53, %v995_v49  ;;  %v1008_v34 = vsel %vm674_vm4, %v909_v17, 0.0  ;;  %v911_v35 = vmul.f32 %v1807_v62, %v1807_v62 }
 0x135   :  { %v812_v33 = vsel %vm674_vm4, %v1770_v44, 0.0  ;;  %v814_v48 = vsel %vm674_vm4, %v1807_v62, 0.0  ;;  %v1010_v46 = vsel %vm674_vm4, %v910_v31, 0.0  ;;  %v912_v49 = vmul.f32 %v1796_v58, %v1796_v58 }
 0x136   :  { %v999_v1 = vadd.f32 %v998_v59, %v997_v57  ;;  %v803_v4 = vadd.f32 %v802_v54, %v801_v55  ;;  %v1012_v50 = vsel %vm674_vm4, %v911_v35, 0.0  ;;  %v913_v53 = vmul.f32 %v1833_v12, %v1833_v12 }
 0x137   :  { %v816_v44 = vsel %vm674_vm4, %v1796_v58, 0.0  ;;  %v818_v62 = vsel %vm674_vm4, %v1833_v12, 0.0  ;;  %v1014_v60 = vsel %vm674_vm4, %v912_v49, 0.0  ;;  %v820_v58 = vsel %vm674_vm4, %v1822_v8, 0.0 }
 0x138   :  { %v1001_v7 = vadd.f32 %v1000_v63, %v999_v1  ;;  %v805_v11 = vadd.f32 %v804_v5, %v803_v4  ;;  %v914_v63 = vmul.f32 %v1822_v8, %v1822_v8  ;;  %v1016_v0 = vsel %vm674_vm4, %v913_v53, 0.0 }
 0x139   :  { %v915_v1 = vmul.f32 %v1859_v28, %v1859_v28  ;;  %v822_v12 = vsel %vm674_vm4, %v1859_v28, 0.0  ;;  %v824_v8 = vsel %vm674_vm4, %v1848_v23, 0.0  ;;  %v826_v28 = vsel %vm674_vm4, %v1885_v45, 0.0 }
 0x13a   :  { %v807_v18 = vadd.f32 %v806_v26, %v805_v11  ;;  %v1003_v19 = vadd.f32 %v1002_v13, %v1001_v7  ;;  %v1018_v11 = vsel %vm674_vm4, %v914_v63, 0.0  ;;  %v916_v13 = vmul.f32 %v1848_v23, %v1848_v23 }
 0x13b   :  { %v1020_v15 = vsel %vm674_vm4, %v915_v1, 0.0  ;;  %v828_v23 = vsel %vm674_vm4, %v1874_v40, 0.0 }
 0x13c   :  { %v1005_v21 = vadd.f32 %v1004_v16, %v1003_v19  ;;  %v809_v24 = vadd.f32 %v808_v22, %v807_v18  ;;  %v917_v16 = vmul.f32 %v1885_v45, %v1885_v45  ;;  %v830_v45 = vsel %vm674_vm4, %v1911_v61, 0.0 }
 0x13e   :  { %v811_v38 = vadd.f32 %v810_v36, %v809_v24  ;;  %v1007_v39 = vadd.f32 %v1006_v30, %v1005_v21  ;;  %v1022_v36 = vsel %vm674_vm4, %v916_v13, 0.0  ;;  %v918_v21 = vmul.f32 %v1874_v40, %v1874_v40 }
 0x13f   :  { %v1024_v24 = vsel %vm674_vm4, %v917_v16, 0.0  ;;  %v919_v30 = vmul.f32 %v1911_v61, %v1911_v61  ;;  %v832_v40 = vsel %vm674_vm4, %v1900_v56, 0.0  ;;  %v834_v61 = vsel %vm674_vm4, %v1937_v14, 0.0 }
 0x140   :  { %v1009_v41 = vadd.f32 %v1008_v34, %v1007_v39  ;;  %v813_v42 = vadd.f32 %v812_v33, %v811_v38  ;;  %v1026_v39 = vsel %vm674_vm4, %v918_v21, 0.0  ;;  %v920_v33 = vmul.f32 %v1900_v56, %v1900_v56 }
 0x141   :  { %v836_v56 = vsel %vm674_vm4, %v1926_v9, 0.0 }
 0x142   :  { %v815_v54 = vadd.f32 %v814_v48, %v813_v42  ;;  %v1011_v55 = vadd.f32 %v1010_v46, %v1009_v41  ;;  %v1028_v48 = vsel %vm674_vm4, %v919_v30, 0.0  ;;  %v921_v41 = vmul.f32 %v1937_v14, %v1937_v14 }
 0x143   :  { %v1030_v53 = vsel %vm674_vm4, %v920_v33, 0.0  ;;  %v838_v14 = vsel %vm674_vm4, %v1963_v32, 0.0 }
 0x144   :  { %v1013_v57 = vadd.f32 %v1012_v50, %v1011_v55  ;;  %v817_v59 = vadd.f32 %v816_v44, %v815_v54  ;;  %v922_v54 = vmul.f32 %v1926_v9, %v1926_v9  ;;  %v1032_v55 = vsel %vm674_vm4, %v921_v41, 0.0 }
 0x145   :  { %v923_v44 = vmul.f32 %v1963_v32, %v1963_v32  ;;  %v840_v9 = vsel %vm674_vm4, %v1952_v27, 0.0  ;;  %v842_v32 = vsel %vm674_vm4, %v1989_v52, 0.0 }
 0x146   :  { %v819_v4 = vadd.f32 %v818_v62, %v817_v59  ;;  %v1015_v5 = vadd.f32 %v1014_v60, %v1013_v57  ;;  %v1034_v63 = vsel %vm674_vm4, %v922_v54, 0.0 }
 0x147   :  { %v1036_v1 = vsel %vm674_vm4, %v923_v44, 0.0 }
 0x148   :  { %v1017_v26 = vadd.f32 %v1016_v0, %v1015_v5  ;;  %v821_v7 = vadd.f32 %v820_v58, %v819_v4  ;;  %v924_v0 = vmul.f32 %v1952_v27, %v1952_v27  ;;  %v925_v4 = vmul.f32 %v1989_v52, %v1989_v52 }
 0x149   :  { %v844_v27 = vsel %vm674_vm4, %v1978_v47, 0.0  ;;  %v846_v52 = vsel %vm674_vm4, %v2015_v6, 0.0 }
 0x14a   :  { %v823_v17 = vadd.f32 %v822_v12, %v821_v7  ;;  %v1019_v18 = vadd.f32 %v1018_v11, %v1017_v26  ;;  %v1038_v7 = vsel %vm674_vm4, %v924_v0, 0.0  ;;  %v926_v11 = vmul.f32 %v1978_v47, %v1978_v47 }
 0x14b   :  { %v1040_v13 = vsel %vm674_vm4, %v925_v4, 0.0  ;;  %v848_v47 = vsel %vm674_vm4, %v2004_v2, 0.0 }
 0x14c   :  { %v1021_v19 = vadd.f32 %v1020_v15, %v1019_v18  ;;  %v825_v22 = vadd.f32 %v824_v8, %v823_v17  ;;  %v927_v15 = vmul.f32 %v2015_v6, %v2015_v6  ;;  %v850_v6 = vsel %vm674_vm4, %v2041_v29, 0.0 }
 0x14e   :  { %v827_v31 = vadd.f32 %v826_v28, %v825_v22  ;;  %v1023_v34 = vadd.f32 %v1022_v36, %v1021_v19  ;;  %v1042_v28 = vsel %vm674_vm4, %v926_v11, 0.0  ;;  %v928_v19 = vmul.f32 %v2004_v2, %v2004_v2 }
 0x14f   :  { %v1044_v22 = vsel %vm674_vm4, %v927_v15, 0.0  ;;  %v929_v36 = vmul.f32 %v2041_v29, %v2041_v29  ;;  %v852_v2 = vsel %vm674_vm4, %v2030_v20, 0.0  ;;  %v854_v29 = vsel %vm674_vm4, %v2067_v51, 0.0 }
 0x150   :  { %v1025_v35 = vadd.f32 %v1024_v24, %v1023_v34  ;;  %v829_v38 = vadd.f32 %v828_v23, %v827_v31  ;;  %v1046_v34 = vsel %vm674_vm4, %v928_v19, 0.0  ;;  %v930_v23 = vmul.f32 %v2030_v20, %v2030_v20 }
 0x151   :  { %v856_v20 = vsel %vm674_vm4, %v2056_v43, 0.0 }
 0x152   :  { %v831_v42 = vadd.f32 %v830_v45, %v829_v38  ;;  %v1027_v46 = vadd.f32 %v1026_v39, %v1025_v35  ;;  %v1048_v45 = vsel %vm674_vm4, %v929_v36, 0.0  ;;  %v931_v35 = vmul.f32 %v2067_v51, %v2067_v51 }
 0x153   :  { %v1050_v41 = vsel %vm674_vm4, %v930_v23, 0.0  ;;  %v858_v51 = vsel %vm674_vm4, %v2093_v10, 0.0 }
 0x154   :  { %v1029_v49 = vadd.f32 %v1028_v48, %v1027_v46  ;;  %v833_v50 = vadd.f32 %v832_v40, %v831_v42  ;;  %v932_v42 = vmul.f32 %v2056_v43, %v2056_v43  ;;  %v1052_v46 = vsel %vm674_vm4, %v931_v35, 0.0 }
 0x155   :  { %v933_v40 = vmul.f32 %v2093_v10, %v2093_v10  ;;  %v860_v43 = vsel %vm674_vm4, %v2082_v3, 0.0  ;;  %v862_v10 = vsel %vm674_vm4, %v2121_v37, 0.0 }
 0x156   :  { %v835_v62 = vadd.f32 %v834_v61, %v833_v50  ;;  %v1031_v57 = vadd.f32 %v1030_v53, %v1029_v49  ;;  %v1054_v54 = vsel %vm674_vm4, %v932_v42, 0.0 }
 0x157   :  { %v1056_v44 = vsel %vm674_vm4, %v933_v40, 0.0 }
 0x158   :  { %v1033_v59 = vadd.f32 %v1032_v55, %v1031_v57  ;;  %v837_v60 = vadd.f32 %v836_v56, %v835_v62  ;;  %v934_v55 = vmul.f32 %v2082_v3, %v2082_v3  ;;  %v935_v62 = vmul.f32 %v2121_v37, %v2121_v37 }
 0x15a   :  { %v839_v5 = vadd.f32 %v838_v14, %v837_v60  ;;  %v1035_v58 = vadd.f32 %v1034_v63, %v1033_v59  ;;  %v1058_v60 = vsel %vm674_vm4, %v934_v55, 0.0  ;;  %v936_v63 = vmul.f32 %v2108_v25, %v2108_v25 }
 0x15b   :  { %v1060_v0 = vsel %vm674_vm4, %v935_v62, 0.0 }
 0x15c   :  { %v1037_v12 = vadd.f32 %v1036_v1, %v1035_v58  ;;  %v841_v26 = vadd.f32 %v840_v9, %v839_v5  ;;  %v864_v5 = vsel %vm674_vm4, %v2108_v25, 0.0  ;;  %v1062_v3 = vsel %vm674_vm4, %v936_v63, 0.0 }
 0x15e   :  { %v843_v16 = vadd.f32 %v842_v32, %v841_v26  ;;  %v1039_v17 = vadd.f32 %v1038_v7, %v1037_v12 }
 0x160   :  { %v1041_v18 = vadd.f32 %v1040_v13, %v1039_v17  ;;  %v845_v8 = vadd.f32 %v844_v27, %v843_v16 }
 0x162   :  { %v847_v21 = vadd.f32 %v846_v52, %v845_v8  ;;  %v1043_v24 = vadd.f32 %v1042_v28, %v1041_v18 }
 0x164   :  { %v1045_v30 = vadd.f32 %v1044_v22, %v1043_v24  ;;  %v849_v31 = vadd.f32 %v848_v47, %v847_v21 }
 0x166   :  { %v851_v38 = vadd.f32 %v850_v6, %v849_v31  ;;  %v1047_v39 = vadd.f32 %v1046_v34, %v1045_v30 }
 0x168   :  { %v1049_v33 = vadd.f32 %v1048_v45, %v1047_v39  ;;  %v853_v48 = vadd.f32 %v852_v2, %v851_v38 }
 0x16a   :  { %v855_v61 = vadd.f32 %v854_v29, %v853_v48  ;;  %v1051_v49 = vadd.f32 %v1050_v41, %v1049_v33 }
 0x16c   :  { %v1053_v50 = vadd.f32 %v1052_v46, %v1051_v49  ;;  %v857_v53 = vadd.f32 %v856_v20, %v855_v61 }
 0x16e   :  { %v859_v57 = vadd.f32 %v858_v51, %v857_v53  ;;  %v1055_v56 = vadd.f32 %v1054_v54, %v1053_v50 }
 0x170   :  { %v1057_v14 = vadd.f32 %v1056_v44, %v1055_v56  ;;  %v861_v59 = vadd.f32 %v860_v43, %v859_v57 }
 0x172   :  { %v863_v1 = vadd.f32 %v862_v10, %v861_v59  ;;  %v1059_v4 = vadd.f32 %v1058_v60, %v1057_v14 }
 0x174   :  { %v865_v58 = vadd.f32 %v864_v5, %v863_v1  ;;  %v1061_v9 = vadd.f32 %v1060_v0, %v1059_v4 }
 0x176   :  { %v866_v32 = vrot.slane %v865_v58, 4  ;;  %v1063_v37 = vadd.f32 %v1062_v3, %v1061_v9 }
 0x178   :  { %v867_v12 = vadd.f32 %v866_v32, %v865_v58  ;;  %v1064_v26 = vrot.slane %v1063_v37, 4 }
 0x17a   :  { %v868_v7 = vrot.slane %v867_v12, 2  ;;  %v1065_v11 = vadd.f32 %v1064_v26, %v1063_v37 }
 0x17c   :  { %v869_v13 = vadd.f32 %v868_v7, %v867_v12  ;;  %v1066_v15 = vrot.slane %v1065_v11, 2 }
 0x17e   :  { %v870_v16 = vrot.slane %v869_v13, 1  ;;  %v1067_v17 = vadd.f32 %v1066_v15, %v1065_v11 }
 0x180   :  { %v871_v27 = vadd.f32 %v870_v16, %v869_v13  ;;  %v1068_v52 = vrot.slane %v1067_v17, 1 }
 0x182   :  { %872 = vst.msk [vmem:[%s2306_s3] sm:$0xff] %vm674_vm4, %v871_v27  ;;  %v1069_v25 = vadd.f32 %v1068_v52, %v1067_v17 }
 0x184   :  { %1070 = vst.msk [vmem:[%s2307_s4] sm:$0xff] %vm674_vm4, %v1069_v25 }

</bundles_post_ra>
